<compile_context>
chip_gen: v5e
topology: v5e:2x2
jax: 0.10.0
libtpu: 0.0.40
codegen_flags: <defaults>
</compile_context>

<pallas_src>
import functools

import jax
import jax.numpy as jnp
from jax.experimental import pallas as pl
from jax.experimental.pallas import tpu as pltpu


def _conv3x3_relu_kernel(x_ref, w_ref, b_ref, m_ref, o_ref, *, H, W, Cin, Cout):
    # x_ref : (1, Cin, H*W)   one image, flattened NCHW (f32)
    # w_ref : (Cout, 9*Cin)   im2col-ordered weights (bf16)
    # b_ref : (Cout, 1)       bias (f32)
    # m_ref : (9, H*W)        per-tap 0/1 boundary masks (f32)
    # o_ref : (1, Cout, H*W)  output (f32), lane-dense last dim
    HW = H * W
    x = x_ref[0]                                                  # (Cin, HW)

    taps = []
    t = 0
    for dh in (-1, 0, 1):
        for dw in (-1, 0, 1):
            d = dh * W + dw                                       # flat source offset
            # rolled[p] == x[p + d]; wrap-around entries are zeroed by the mask.
            rolled = pltpu.roll(x, shift=(-d) % HW, axis=1) if d != 0 else x
            mask = m_ref[pl.ds(t, 1), :]                          # (1, HW) broadcast over Cin
            taps.append(rolled * mask)
            t += 1

    # im2col slab, rows ordered (tap, cin) to match w_ref's (Cout, 9*Cin).
    slab = jnp.concatenate(taps, axis=0).astype(jnp.bfloat16)     # (9*Cin, HW)

    acc = jnp.dot(w_ref[...], slab,
                  preferred_element_type=jnp.float32)             # (Cout, HW) f32
    acc = acc + b_ref[...]                                        # (Cout, 1) lane-broadcast
    o_ref[0] = jnp.maximum(acc, 0.0).astype(o_ref.dtype)


def unit_forward(x_nchw, weight, bias):
    """Forward pass of `Unit` (Conv2d 3x3, stride 1, padding 1 + ReLU).

    x_nchw : (N, Cin, H, W) float32
    weight : (Cout, Cin, 3, 3) float32 (PyTorch OIHW layout)
    bias   : (Cout,) float32
    returns: (N, Cout, H, W) float32
    """
    N, Cin, H, W = x_nchw.shape
    Cout = weight.shape[0]
    HW = H * W

    # Metadata-only reshape: no transpose, no pad, no extra HBM pass.
    x_flat = x_nchw.reshape(N, Cin, HW)

    # Weights -> (Cout, 9*Cin), inner order (kh, kw, cin) to match the slab.
    # bf16 operands for the MXU; accumulation stays f32 inside the kernel.
    # (In a full network the activations would also be stored bf16 at the
    #  boundary to halve the HBM stream; here the module input is f32.)
    w2 = jnp.transpose(weight, (0, 2, 3, 1)).reshape(Cout, 9 * Cin)
    w2 = w2.astype(jnp.bfloat16)
    b2 = bias.reshape(Cout, 1).astype(jnp.float32)

    # Per-tap validity masks for the pad=1 halo (tiny, constant-folded by XLA).
    p = jnp.arange(HW, dtype=jnp.int32)
    hh, ww = p // W, p % W
    masks = []
    for dh in (-1, 0, 1):
        for dw in (-1, 0, 1):
            valid = ((hh + dh >= 0) & (hh + dh < H) &
                     (ww + dw >= 0) & (ww + dw < W))
            masks.append(valid)
    masks = jnp.stack(masks, axis=0).astype(jnp.float32)          # (9, HW)

    kernel = functools.partial(_conv3x3_relu_kernel, H=H, W=W, Cin=Cin, Cout=Cout)

    # TODO(synk): for production shapes (large H / Cin), add a grid axis over
    # row tiles (1-row halo via the index_map) so blocks double-buffer inside
    # v7x's 64 MiB VMEM and the pipeline has more than N steps; at these toy
    # shapes one whole image per grid step is far below the VMEM limit.
    out_flat = pl.pallas_call(
        kernel,
        out_shape=jax.ShapeDtypeStruct((N, Cout, HW), jnp.float32),
        grid_spec=pltpu.PrefetchScalarGridSpec(
            num_scalar_prefetch=0,
            grid=(N,),
            in_specs=[
                pl.BlockSpec((1, Cin, HW), lambda n: (n, 0, 0)),
                pl.BlockSpec((Cout, 9 * Cin), lambda n: (0, 0)),
                pl.BlockSpec((Cout, 1), lambda n: (0, 0)),
                pl.BlockSpec((9, HW), lambda n: (0, 0)),
            ],
            out_specs=pl.BlockSpec((1, Cout, HW), lambda n: (n, 0, 0)),
        ),
        compiler_params=pltpu.CompilerParams(
            dimension_semantics=("parallel",),
        ),
    )(x_flat, w2, b2, masks)

    # Metadata-only reshape back to NCHW.
    return out_flat.reshape(N, Cout, H, W)


def _reference(x_nchw, weight, bias):
    # Reference with the same bf16 rounding of the matmul operands as the
    # kernel (f32 accumulation), so the comparison is tight and catches any
    # indexing / mask / roll error.
    xb = x_nchw.astype(jnp.bfloat16).astype(jnp.float32)
    wb = weight.astype(jnp.bfloat16).astype(jnp.float32)
    out = jax.lax.conv_general_dilated(
        xb, wb,
        window_strides=(1, 1), padding=((1, 1), (1, 1)),
        dimension_numbers=("NCHW", "OIHW", "NCHW"),
    )
    return jnp.maximum(out + bias[None, :, None, None], 0.0)


if __name__ == "__main__":
    # Small shapes consistent with the module: N=2, Cin=4, Cout=8, H=W=16.
    N, Cin, Cout, H, W = 2, 4, 8, 16, 16
    key = jax.random.PRNGKey(0)
    kx, kw, kb = jax.random.split(key, 3)

    x = jax.random.normal(kx, (N, Cin, H, W), dtype=jnp.float32)

    # Deterministic init mirroring nn.Conv2d default: U(-k, k), k = 1/sqrt(Cin*3*3).
    fan_in = Cin * 3 * 3
    bound = 1.0 / jnp.sqrt(jnp.float32(fan_in))
    weight = jax.random.uniform(kw, (Cout, Cin, 3, 3), jnp.float32, -bound, bound)
    bias = jax.random.uniform(kb, (Cout,), jnp.float32, -bound, bound)

    fwd = jax.jit(unit_forward)
    out = jax.block_until_ready(fwd(x, weight, bias))
    ref = jax.block_until_ready(_reference(x, weight, bias))

    assert out.shape == (N, Cout, H, W)
    assert jnp.allclose(out, ref, atol=1e-3, rtol=1e-3)
    print("KERNEL_OK")
</pallas_src>

<mosaic_0001>
module attributes {stable_mosaic.version = 11 : i64} {
  func.func @_conv3x3_relu_kernel(%arg0: i32, %arg1: memref<1x4x256xf32, #tpu.memory_space<vmem>>, %arg2: memref<8x36xbf16, #tpu.memory_space<vmem>>, %arg3: memref<8x1xf32, #tpu.memory_space<vmem>>, %arg4: memref<9x256xf32, #tpu.memory_space<vmem>>, %arg5: memref<1x8x256xf32, #tpu.memory_space<vmem>>) attributes {dimension_semantics = [#tpu.dimension_semantics<parallel>], iteration_bounds = array<i64: 2>, scalar_prefetch = 0 : i64, scratch_operands = 0 : i64, tpu.core_type = #tpu.core_type<tc>, window_params = [{transform_indices = @transform_0, window_bounds = array<i64: 1, 4, 256>}, {pipeline_mode = #tpu.pipeline_mode<synchronous>, transform_indices = @transform_1, window_bounds = array<i64: 8, 36>}, {pipeline_mode = #tpu.pipeline_mode<synchronous>, transform_indices = @transform_2, window_bounds = array<i64: 8, 1>}, {pipeline_mode = #tpu.pipeline_mode<synchronous>, transform_indices = @transform_3, window_bounds = array<i64: 9, 256>}, {transform_indices = @transform_4, window_bounds = array<i64: 1, 8, 256>}]} {
    %c0 = arith.constant 0 : index
    %c0_0 = arith.constant 0 : index
    %c0_1 = arith.constant 0 : index
    %0 = vector.load %arg1[%c0, %c0_0, %c0_1] : memref<1x4x256xf32, #tpu.memory_space<vmem>>, vector<1x4x256xf32>
    %1 = vector.shape_cast %0 : vector<1x4x256xf32> to vector<4x256xf32>
    %c17_i32 = arith.constant 17 : i32
    %2 = tpu.dynamic_rotate %1 by %c17_i32 dim 1 : vector<4x256xf32>, i32 -> vector<4x256xf32>
    %c0_2 = arith.constant 0 : index
    %c0_3 = arith.constant 0 : index
    %3 = vector.load %arg4[%c0_2, %c0_3] : memref<9x256xf32, #tpu.memory_space<vmem>>, vector<1x256xf32>
    %4 = vector.broadcast %3 : vector<1x256xf32> to vector<4x256xf32>
    %5 = arith.mulf %2, %4 : vector<4x256xf32>
    %c16_i32 = arith.constant 16 : i32
    %6 = tpu.dynamic_rotate %1 by %c16_i32 dim 1 : vector<4x256xf32>, i32 -> vector<4x256xf32>
    %c1 = arith.constant 1 : index
    %c0_4 = arith.constant 0 : index
    %7 = vector.load %arg4[%c1, %c0_4] : memref<9x256xf32, #tpu.memory_space<vmem>>, vector<1x256xf32>
    %8 = vector.broadcast %7 : vector<1x256xf32> to vector<4x256xf32>
    %9 = arith.mulf %6, %8 : vector<4x256xf32>
    %c15_i32 = arith.constant 15 : i32
    %10 = tpu.dynamic_rotate %1 by %c15_i32 dim 1 : vector<4x256xf32>, i32 -> vector<4x256xf32>
    %c2 = arith.constant 2 : index
    %c0_5 = arith.constant 0 : index
    %11 = vector.load %arg4[%c2, %c0_5] : memref<9x256xf32, #tpu.memory_space<vmem>>, vector<1x256xf32>
    %12 = vector.broadcast %11 : vector<1x256xf32> to vector<4x256xf32>
    %13 = arith.mulf %10, %12 : vector<4x256xf32>
    %c1_i32 = arith.constant 1 : i32
    %14 = tpu.dynamic_rotate %1 by %c1_i32 dim 1 : vector<4x256xf32>, i32 -> vector<4x256xf32>
    %c3 = arith.constant 3 : index
    %c0_6 = arith.constant 0 : index
    %15 = vector.load %arg4[%c3, %c0_6] : memref<9x256xf32, #tpu.memory_space<vmem>>, vector<1x256xf32>
    %16 = vector.broadcast %15 : vector<1x256xf32> to vector<4x256xf32>
    %17 = arith.mulf %14, %16 : vector<4x256xf32>
    %c4 = arith.constant 4 : index
    %c0_7 = arith.constant 0 : index
    %18 = vector.load %arg4[%c4, %c0_7] : memref<9x256xf32, #tpu.memory_space<vmem>>, vector<1x256xf32>
    %19 = vector.broadcast %18 : vector<1x256xf32> to vector<4x256xf32>
    %20 = arith.mulf %1, %19 : vector<4x256xf32>
    %c255_i32 = arith.constant 255 : i32
    %21 = tpu.dynamic_rotate %1 by %c255_i32 dim 1 : vector<4x256xf32>, i32 -> vector<4x256xf32>
    %c5 = arith.constant 5 : index
    %c0_8 = arith.constant 0 : index
    %22 = vector.load %arg4[%c5, %c0_8] : memref<9x256xf32, #tpu.memory_space<vmem>>, vector<1x256xf32>
    %23 = vector.broadcast %22 : vector<1x256xf32> to vector<4x256xf32>
    %24 = arith.mulf %21, %23 : vector<4x256xf32>
    %c241_i32 = arith.constant 241 : i32
    %25 = tpu.dynamic_rotate %1 by %c241_i32 dim 1 : vector<4x256xf32>, i32 -> vector<4x256xf32>
    %c6 = arith.constant 6 : index
    %c0_9 = arith.constant 0 : index
    %26 = vector.load %arg4[%c6, %c0_9] : memref<9x256xf32, #tpu.memory_space<vmem>>, vector<1x256xf32>
    %27 = vector.broadcast %26 : vector<1x256xf32> to vector<4x256xf32>
    %28 = arith.mulf %25, %27 : vector<4x256xf32>
    %c240_i32 = arith.constant 240 : i32
    %29 = tpu.dynamic_rotate %1 by %c240_i32 dim 1 : vector<4x256xf32>, i32 -> vector<4x256xf32>
    %c7 = arith.constant 7 : index
    %c0_10 = arith.constant 0 : index
    %30 = vector.load %arg4[%c7, %c0_10] : memref<9x256xf32, #tpu.memory_space<vmem>>, vector<1x256xf32>
    %31 = vector.broadcast %30 : vector<1x256xf32> to vector<4x256xf32>
    %32 = arith.mulf %29, %31 : vector<4x256xf32>
    %c239_i32 = arith.constant 239 : i32
    %33 = tpu.dynamic_rotate %1 by %c239_i32 dim 1 : vector<4x256xf32>, i32 -> vector<4x256xf32>
    %c8 = arith.constant 8 : index
    %c0_11 = arith.constant 0 : index
    %34 = vector.load %arg4[%c8, %c0_11] : memref<9x256xf32, #tpu.memory_space<vmem>>, vector<1x256xf32>
    %35 = vector.broadcast %34 : vector<1x256xf32> to vector<4x256xf32>
    %36 = arith.mulf %33, %35 : vector<4x256xf32>
    %37 = tpu.concatenate %5, %9, %13, %17, %20, %24, %28, %32, %36 in 0 : vector<4x256xf32>, vector<4x256xf32>, vector<4x256xf32>, vector<4x256xf32>, vector<4x256xf32>, vector<4x256xf32>, vector<4x256xf32>, vector<4x256xf32>, vector<4x256xf32> -> vector<36x256xf32>
    %38 = arith.truncf %37 : vector<36x256xf32> to vector<36x256xbf16>
    %c0_12 = arith.constant 0 : index
    %c0_13 = arith.constant 0 : index
    %39 = vector.load %arg2[%c0_12, %c0_13] : memref<8x36xbf16, #tpu.memory_space<vmem>>, vector<8x36xbf16>
    %cst = arith.constant dense<0.000000e+00> : vector<8x256xf32>
    %40 = tpu.matmul %39, %38, %cst {dimension_numbers = #tpu.dot_dimension_numbers<[1], [0], [0], [1], [0, 0, 1, 1], [], []>} : vector<8x36xbf16>, vector<36x256xbf16>, vector<8x256xf32> -> vector<8x256xf32>
    %c0_14 = arith.constant 0 : index
    %c0_15 = arith.constant 0 : index
    %41 = vector.load %arg3[%c0_14, %c0_15] : memref<8x1xf32, #tpu.memory_space<vmem>>, vector<8x1xf32>
    %42 = vector.broadcast %41 : vector<8x1xf32> to vector<8x256xf32>
    %43 = arith.addf %40, %42 : vector<8x256xf32>
    %cst_16 = arith.constant 0.000000e+00 : f32
    %44 = vector.broadcast %cst_16 : f32 to vector<8x256xf32>
    %45 = arith.maximumf %43, %44 : vector<8x256xf32>
    %c0_17 = arith.constant 0 : index
    %c0_18 = arith.constant 0 : index
    %c0_19 = arith.constant 0 : index
    %46 = vector.load %arg5[%c0_17, %c0_18, %c0_19] : memref<1x8x256xf32, #tpu.memory_space<vmem>>, vector<1x8x256xf32>
    %47 = vector.shape_cast %46 : vector<1x8x256xf32> to vector<8x256xf32>
    %48 = vector.shape_cast %45 : vector<8x256xf32> to vector<1x8x256xf32>
    tpu.vector_store %arg5[%c0_17, %c0_18, %c0_19], %48 {strides = array<i32>} : memref<1x8x256xf32, #tpu.memory_space<vmem>>, vector<1x8x256xf32>,
    return
  }
  func.func @transform_0(%arg0: i32) -> (i32, i32, i32) {
    %c0_i32 = arith.constant 0 : i32
    %c0_i32_0 = arith.constant 0 : i32
    %c0_i32_1 = arith.constant 0 : i32
    return %arg0, %c0_i32, %c0_i32_0 : i32, i32, i32
  }
  func.func @transform_1(%arg0: i32) -> (i32, i32) {
    %c0_i32 = arith.constant 0 : i32
    %c0_i32_0 = arith.constant 0 : i32
    %c0_i32_1 = arith.constant 0 : i32
    return %c0_i32, %c0_i32_0 : i32, i32
  }
  func.func @transform_2(%arg0: i32) -> (i32, i32) {
    %c0_i32 = arith.constant 0 : i32
    %c0_i32_0 = arith.constant 0 : i32
    %c0_i32_1 = arith.constant 0 : i32
    return %c0_i32, %c0_i32_0 : i32, i32
  }
  func.func @transform_3(%arg0: i32) -> (i32, i32) {
    %c0_i32 = arith.constant 0 : i32
    %c0_i32_0 = arith.constant 0 : i32
    %c0_i32_1 = arith.constant 0 : i32
    return %c0_i32, %c0_i32_0 : i32, i32
  }
  func.func @transform_4(%arg0: i32) -> (i32, i32, i32) {
    %c0_i32 = arith.constant 0 : i32
    %c0_i32_0 = arith.constant 0 : i32
    %c0_i32_1 = arith.constant 0 : i32
    return %arg0, %c0_i32, %c0_i32_0 : i32, i32, i32
  }
}

</mosaic_0001>

<bundles_post_ra>
// kernel: unit_forward.1
= control target key start
LH: loop header
LB: loop body
LE: loop exit
PB: predicated region body
PF: predicated region fallthrough
CT: control target
= control target key end

     0   :  { %s611_s15 = smov 0   ;;  %s712_s0 = inlined_call_operand.vmem [shape: f32[2,4,256], index: 0, kind: input, shape index: {}]   ;;  %s713_s1 = inlined_call_operand.vmem [shape: bf16[8,36], index: 1, kind: input, shape index: {}]   ;;  %s714_s2 = inlined_call_operand.vmem [shape: f32[8,1], index: 2, kind: input, shape index: {}]   ;;  %s715_s3 = inlined_call_operand.vmem [shape: f32[9,256], index: 3, kind: input, shape index: {}]   ;;  %s716_s4 = inlined_call_operand.vmem [shape: f32[2,8,256], index: 4, kind: output, shape index: {}]  }
   0x1 LB: > { %s527_s16 = sadd.s32 4294967295, %s575_s15   ;;  %p531_p0 = scmp.ge.s32.totalorder %s575_s15, 1  ;;  %s575_s15 = sphi %s611_s15, %s14_s15  }
   0x2   : > { %p162_p1 = scmp.lt.s32.totalorder %s575_s15, 3 }
   0x4   : > { %p163_p2 = pnand %p531_p0, %p162_p1 }
   0x5   : > { %p188_p3 = scmp.lt.s32.totalorder (!%p163_p2), %s527_s16, 1  ;;  %s577_s21 = smov (!%p163_p2), 17  }
   0x6   : > { %166 = sbr.rel (%p163_p2) target bundleno = 353 (0x161), region = 36  ;;  %s578_s22 = smov (!%p163_p2), 16  }
   0x7   : > { %s579_s23 = smov (!%p163_p2), 1   ;;  %s580_s24 = smov (!%p163_p2), 127  }
   0x8   : > { %s581_s25 = smov (!%p163_p2), 113   ;;  %s582_s26 = smov (!%p163_p2), 112  }
   0x9   : > { %s583_s27 = smov (!%p163_p2), 111   ;;  %s584_s28 = smov (!%p163_p2), 15  }
   0xb   : > { %s718_s16 = smov (!%p188_p3, %s527_s16), 1  ;;  %v539_v17 = vld [vmem:[%s715_s3 + $0x4] ss:$8 sm:$0x3]  ;;  %vm292_vm0 = vcmask 1043456   ;;  %v210_v29 = vlaneseq  ;;  %v585_v35 = vmov 0  }
   0xc   : > { %s548_s17 = sshll.u32 %s718_s16, 3  ;;  %v290_v18 = vperm.slane %v539_v17, 1  ;;  %v289_v19 = vperm.slane %v539_v17, 0  ;;  %v425_v34 = vld [vmem:[%s714_s2] sm:$0xff]  ;;  %567 = vset.pattern.permute.xlu1 %v585_v35  ;;  %568 = vset.pattern.permute.xlu0 %v585_v35  ;;  %vm435_vm8 = vcmask 1041408   ;;  %vm431_vm10 = vcmask 293888  }
   0xd   : > { %s192_s20 = scalar_lea.vmem %s712_s0, %s548_s17  ;;  %v633_v33 = vand.u32 127, %v210_v29  ;;  %v536_v36 = vld [vmem:[%s715_s3 + $0x1] ss:$8 sm:$0x3] }
   0xe   : > { %v199_v0 = vld [vmem:[%s192_s20] sm:$0xff]  ;;  %v291_v20 = vrot.slane %v290_v18, 4  ;;  %v238_v40 = vperm.slane %v536_v36, 0  ;;  %v239_v41 = vperm.slane %v536_v36, 1 }
   0xf   : > { %201 = vst [vmem:[#allocation1] ss:$2 sm:$0xff] %v199_v0  ;;  %vm232_vm1 = vcmp.lt.s32.totalorder %v633_v33, 16  ;;  %v540_v37 = vld [vmem:[%s715_s3 + $0x5] ss:$8 sm:$0x3] }
  0x10   : > { %v293_v21 = vsel %vm292_vm0, %v289_v19, %v291_v20  ;;  %v542_v38 = vld [vmem:[%s715_s3 + $0x7] ss:$8 sm:$0x3]  ;;  %vm347_vm2 = vcmp.lt.s32.totalorder %v633_v33, 112  ;;  %vm305_vm3 = vcmp.lt.s32.totalorder %v633_v33, 127  ;;  %v311_v44 = vperm.slane %v540_v37, 0 }
  0x11   : > { %v295_v22 = vmul.f32 %v293_v21, %v199_v0  ;;  %v538_v42 = vld [vmem:[%s715_s3 + $0x3] ss:$8 sm:$0x3]  ;;  %v353_v45 = vperm.slane %v542_v38, 0  ;;  %v354_v46 = vperm.slane %v542_v38, 1  ;;  %v312_v50 = vperm.slane %v540_v37, 1 }
  0x12   : > { %v541_v55 = vld [vmem:[%s715_s3 + $0x6] ss:$8 sm:$0x3]  ;;  %vm274_vm4 = vcmp.lt.s32.totalorder %v633_v33, 1  ;;  %v280_v56 = vperm.slane %v538_v42, 0  ;;  %v281_v57 = vperm.slane %v538_v42, 1 }
  0x13   : > { %v543_v59 = vld [vmem:[%s715_s3 + $0x10] ss:$8 sm:$0x3]  ;;  %vm326_vm5 = vcmp.lt.s32.totalorder %v633_v33, 113  ;;  %vm212_vm6 = vcmp.lt.s32.totalorder %v633_v33, 17  ;;  %vm368_vm7 = vcmp.lt.s32.totalorder %v633_v33, 111 }
  0x14   : > { %v215_v63 = vld [vmem:[%s715_s3] ss:$8 sm:$0x3]  ;;  %v537_v19 = vld [vmem:[%s715_s3 + $0x2] ss:$8 sm:$0x3] }
  0x15   : > { %vm253_vm9 = vcmp.lt.s32.totalorder %v633_v33, 15 }
  0x16   : > { %v202_v1 = vld.sshfl [vmem:[#allocation1] sm:$0xff pattern:$0x75316420]  ;;  %v203_v2 = vld.sshfl [vmem:[#allocation1 + $0x8] sm:$0xff pattern:$0x75316420] }
  0x17   : > { %223 = vst [vmem:[#allocation1] ss:$2 sm:$0xff] %v199_v0  ;;  %206 = vrot.lane.b32.xlu0 %v202_v1, %s577_s21 }
  0x1e   : > { %v224_v3 = vld.sshfl [vmem:[#allocation1] sm:$0xff pattern:$0x75316420]  ;;  %v225_v4 = vld.sshfl [vmem:[#allocation1 + $0x8] sm:$0xff pattern:$0x75316420] }
  0x1f   : > { %244 = vst [vmem:[#allocation1] ss:$2 sm:$0xff] %v199_v0  ;;  %230 = vrot.lane.b32.xlu0 %v225_v4, %s578_s22  ;;  %228 = vrot.lane.b32.xlu2 %v224_v3, %s578_s22  ;;  %v333_v3 = vperm.slane %v541_v55, 1  ;;  %v374_v4 = vperm.slane %v543_v59, 0 }
  0x26   : > { %v245_v5 = vld.sshfl [vmem:[#allocation1] sm:$0xff pattern:$0x75316420]  ;;  %v246_v6 = vld.sshfl [vmem:[#allocation1 + $0x8] sm:$0xff pattern:$0x75316420] }
  0x27   : > { %265 = vst [vmem:[#allocation1] ss:$2 sm:$0xff] %v199_v0 }
  0x2e   : > { %v266_v7 = vld.sshfl [vmem:[#allocation1] sm:$0xff pattern:$0x75316420]  ;;  %v267_v8 = vld.sshfl [vmem:[#allocation1 + $0x8] sm:$0xff pattern:$0x75316420] }
  0x2f   : > { %270 = vrot.lane.b32.xlu1 %v266_v7, %s579_s23  ;;  %296 = vst [vmem:[#allocation1] ss:$2 sm:$0xff] %v199_v0  ;;  %272 = vrot.lane.b32.xlu2 %v267_v8, %s579_s23  ;;  %v217_v8 = vperm.slane %v215_v63, 0 }
  0x36   : > { %v297_v9 = vld.sshfl [vmem:[#allocation1] sm:$0xff pattern:$0x75316420]  ;;  %v298_v10 = vld.sshfl [vmem:[#allocation1 + $0x8] sm:$0xff pattern:$0x75316420] }
  0x37   : > { %301 = vrot.lane.b32.xlu1 %v297_v9, %s580_s24  ;;  %317 = vst [vmem:[#allocation1] ss:$2 sm:$0xff] %v199_v0  ;;  %v218_v9 = vperm.slane %v215_v63, 1 }
  0x3e   : > { %v319_v11 = vld.sshfl [vmem:[#allocation1 + $0x8] sm:$0xff pattern:$0x75316420]  ;;  %v318_v12 = vld.sshfl [vmem:[#allocation1] sm:$0xff pattern:$0x75316420] }
  0x3f   : > { %303 = vrot.lane.b32.xlu1 %v298_v10, %s580_s24  ;;  %322 = vrot.lane.b32.xlu0 %v318_v12, %s581_s25  ;;  %338 = vst [vmem:[#allocation1] ss:$2 sm:$0xff] %v199_v0 }
  0x46   : > { %v339_v13 = vld.sshfl [vmem:[#allocation1] sm:$0xff pattern:$0x75316420]  ;;  %v340_v14 = vld.sshfl [vmem:[#allocation1 + $0x8] sm:$0xff pattern:$0x75316420] }
  0x47   : > { %324 = vrot.lane.b32.xlu1 %v319_v11, %s581_s25  ;;  %359 = vst [vmem:[#allocation1] ss:$2 sm:$0xff] %v199_v0  ;;  %343 = vrot.lane.b32.xlu2 %v339_v13, %s582_s26 }
  0x4e   : > { %v360_v15 = vld.sshfl [vmem:[#allocation1] sm:$0xff pattern:$0x75316420]  ;;  %v361_v16 = vld.sshfl [vmem:[#allocation1 + $0x8] sm:$0xff pattern:$0x75316420] }
  0x4f   : > { %208 = vrot.lane.b32.xlu1 %v203_v2, %s577_s21  ;;  %364 = vrot.lane.b32.xlu0 %v360_v15, %s583_s27  ;;  %393 = vst [vmem:[#allocation1] ss:$2 sm:$0xff] %v295_v22  ;;  %v332_v2 = vperm.slane %v541_v55, 0 }
  0x50   : > { %345 = vrot.lane.b32.xlu2 %v340_v14, %s582_s26 }
  0x56   : > { %v395_v29 = vld.sshfl [vmem:[#allocation1 + $0x8] sm:$0xff pattern:$0x75316420] }
  0x57   : > { %366 = vrot.lane.b32.xlu0 %v361_v16, %s583_s27  ;;  %428 = vperm.xlu1 %567, %v425_v34   ;;  %v260_v34 = vperm.slane %v537_v19, 1  ;;  %s549_s27 = sshll.u32 %s718_s16, 4 }
  0x58   : > { %249 = vrot.lane.b32.xlu2 %v245_v5, %s584_s28  ;;  %v375_v5 = vperm.slane %v543_v59, 1  ;;  %s197_s30 = scalar_lea.vmem %s716_s4, %s549_s27 }
  0x5f   : > { %251 = vrot.lane.b32.xlu0 %v246_v6, %s584_s28 }
  0x79   : > { %v229_v23 = vpop.permute.xlu2 %228 }
  0x89   : > { %v631_v25 = vpop.permute.xlu0 %206  ;;  %v273_v26 = vpop.permute.xlu2 %272 }
  0x91   : > { %v231_v28 = vpop.permute.xlu0 %230 }
  0x92   : > { %v234_v43 = vsel %vm232_vm1, %v231_v28, %v229_v23  ;;  %v233_v49 = vsel %vm232_vm1, %v229_v23, %v231_v28  ;;  %v394_v28 = vld.sshfl [vmem:[#allocation1] sm:$0xff pattern:$0x75316420] }
  0x93   : > { %v661_v58 = vmul.f32 %v238_v40, %v234_v43  ;;  %v666_v60 = vmul.f32 %v239_v41, %v233_v49 }
  0xa1   : > { %v271_v24 = vpop.permute.xlu1 %270  ;;  %v344_v30 = vpop.permute.xlu2 %343 }
  0xa2   : > { %v275_v10 = vsel %vm274_vm4, %v271_v24, %v273_v26  ;;  %v276_v11 = vsel %vm274_vm4, %v273_v26, %v271_v24 }
  0xa3   : > { %v285_v24 = vmul.f32 %v281_v57, %v275_v10 }
  0xa9   : > { %v302_v27 = vpop.permute.xlu1 %301 }
  0xaa   : > { %v346_v39 = vpop.permute.xlu2 %345 }
  0xab   : > { %v348_v51 = vsel %vm347_vm2, %v344_v30, %v346_v39  ;;  %v349_v52 = vsel %vm347_vm2, %v346_v39, %v344_v30  ;;  %v284_v30 = vmul.f32 %v280_v56, %v276_v11 }
  0xac   : > { %v357_v61 = vmul.f32 %v353_v45, %v348_v51  ;;  %v358_v62 = vmul.f32 %v354_v46, %v349_v52  ;;  %v383_v45 = vrot.slane %v666_v60, 4 }
  0xad   : > { %v388_v52 = vrot.slane %v284_v30, 4 }
  0xae   : > { %v406_v12 = vrot.slane %v357_v61, 4  ;;  %v407_v13 = vrot.slane %v358_v62, 4  ;;  %v424_v61 = vld [vmem:[%s713_s1] sm:$0xf] }
  0xb1   : > { %v304_v31 = vpop.permute.xlu1 %303  ;;  %v323_v32 = vpop.permute.xlu0 %322 }
  0xb2   : > { %v306_v53 = vsel %vm305_vm3, %v302_v27, %v304_v31  ;;  %v307_v54 = vsel %vm305_vm3, %v304_v31, %v302_v27  ;;  %v250_v41 = vpop.permute.xlu2 %249 }
  0xb3   : > { %v315_v0 = vmul.f32 %v311_v44, %v306_v53  ;;  %v316_v1 = vmul.f32 %v312_v50, %v307_v54  ;;  %v382_v44 = vrot.slane %v661_v58, 4  ;;  %v389_v53 = vrot.slane %v285_v24, 4 }
  0xb5   : > { %v400_v15 = vrot.slane %v315_v0, 4  ;;  %v401_v16 = vrot.slane %v316_v1, 4 }
  0xb7   : > { %v414_v37 = vsel %vm292_vm0, %v394_v28, %v400_v15  ;;  %v415_v38 = vsel %vm292_vm0, %v395_v29, %v401_v16 }
  0xb9   : > { %v325_v47 = vpop.permute.xlu1 %324 }
  0xba   : > { %v327_v6 = vsel %vm326_vm5, %v323_v32, %v325_v47  ;;  %v328_v7 = vsel %vm326_vm5, %v325_v47, %v323_v32  ;;  %v259_v32 = vperm.slane %v537_v19, 0 }
  0xbb   : > { %v336_v20 = vmul.f32 %v332_v2, %v327_v6  ;;  %v337_v21 = vmul.f32 %v333_v3, %v328_v7 }
  0xbd   : > { %v416_v42 = vsel %vm292_vm0, %v336_v20, %v406_v12  ;;  %v417_v43 = vsel %vm292_vm0, %v337_v21, %v407_v13 }
  0xbe   : > { %v420_v50 = vpack.c.bf16 %v416_v42, %v414_v37  ;;  %v421_v51 = vpack.c.bf16 %v417_v43, %v415_v38 }
  0xc1   : > { %v365_v48 = vpop.permute.xlu0 %364  ;;  %v209_v22 = vpop.permute.xlu1 %208 }
  0xc2   : > { %v213_v35 = vsel %vm212_vm6, %v631_v25, %v209_v22  ;;  %v214_v36 = vsel %vm212_vm6, %v209_v22, %v631_v25 }
  0xc3   : > { %v221_v46 = vmul.f32 %v217_v8, %v214_v36  ;;  %v222_v47 = vmul.f32 %v218_v9, %v213_v35 }
  0xc5   : > { %v410_v56 = vsel %vm292_vm0, %v221_v46, %v382_v44  ;;  %v411_v58 = vsel %vm292_vm0, %v222_v47, %v383_v45 }
  0xc9   : > { %v367_v14 = vpop.permute.xlu0 %366  ;;  %v429_v62 = vpop.permute.xlu1 %428 }
  0xca   : > { %v369_v17 = vsel %vm368_vm7, %v365_v48, %v367_v14  ;;  %v370_v18 = vsel %vm368_vm7, %v367_v14, %v365_v48 }
  0xcb   : > { %v378_v23 = vmul.f32 %v374_v4, %v369_v17  ;;  %v379_v27 = vmul.f32 %v375_v5, %v370_v18 }
  0xcd   : > { %v422_v26 = vpack.c.bf16 %v378_v23, %v378_v23  ;;  %v423_v31 = vpack.c.bf16 %v379_v27, %v379_v27 }
  0xcf   : > { %v437_v39 = vsel %vm435_vm8, %v422_v26, 0  ;;  %v440_v40 = vsel %vm435_vm8, %v423_v31, 0 }
  0xd0   : > { %447 = vmatpush.bf16.msra.mxu0 %v437_v39  ;;  %460 = vmatpush.bf16.msra.mxu1 %v440_v40 }
  0xd1   : > { %v252_v25 = vpop.permute.xlu0 %251 }
  0xd2   : > { %v254_v48 = vsel %vm253_vm9, %v250_v41, %v252_v25  ;;  %v255_v49 = vsel %vm253_vm9, %v252_v25, %v250_v41 }
  0xd3   : > { %v263_v54 = vmul.f32 %v259_v32, %v255_v49  ;;  %v264_v55 = vmul.f32 %v260_v34, %v254_v48 }
  0xd4   : > { %448 = vmatpush.bf16.msra.mxu0 %v420_v50  ;;  %461 = vmatpush.bf16.msra.mxu1 %v421_v51 }
  0xd5   : > { %v412_v57 = vsel %vm292_vm0, %v263_v54, %v388_v52  ;;  %v413_v59 = vsel %vm292_vm0, %v264_v55, %v389_v53 }
  0xd6   : > { %v418_v60 = vpack.c.bf16 %v412_v57, %v410_v56  ;;  %v419_v33 = vpack.c.bf16 %v413_v59, %v411_v58 }
  0xd8   : > { %449 = vmatpush.bf16.msra.mxu0 %v418_v60  ;;  %462 = vmatpush.bf16.msra.mxu1 %v419_v33 }
  0xdb   : > { %544 = vmatmul.msk.bf16.vlgmr.msra.gmra.mxu0 %vm431_vm10, %v424_v61  ;;  %545 = vmatmul.msk.bf16.vlgmr.msra.gmra.mxu1 %vm431_vm10, %v424_v61 }
 0x158   : > { %v451_v63 = vpop.f32.mrf.mxu0  ;;  %v464_v0 = vpop.f32.mrf.mxu1 }
 0x159   : > { %v452_v1 = vadd.f32 %v451_v63, %v429_v62  ;;  %v465_v2 = vadd.f32 %v464_v0, %v429_v62 }
 0x15b   : > { %v468_v3 = vmax.f32 %v452_v1, 0.0  ;;  %v469_v4 = vmax.f32 %v465_v2, 0.0 }
 0x15d   : > { %470 = vst [vmem:[%s197_s30] sm:$0xff] %v468_v3 }
 0x15e   : > { %471 = vst [vmem:[%s197_s30 + $0x8] sm:$0xff] %v469_v4 }
 0x160   : > { %v453_v5 = vpop.f32.mrf.mxu0  ;;  %v466_v6 = vpop.f32.mrf.mxu1 }
 0x161 PF: > { %s14_s15 = sadd.s32 1, %s575_s15  }
 0x162   : > { %p11_p4 = scmp.ge.s32.totalorder %s14_s15, 4  }
 0x164   :  { %13 = sbr.rel (!%p11_p4) target bundleno = 1 (0x1), region = 74 }

</bundles_post_ra>
